<compile_context>
chip_gen: v5e
topology: v5e:2x2
jax: 0.10.0
libtpu: 0.0.40
codegen_flags: <defaults>
</compile_context>

<pallas_src>
import math

import jax
import jax.numpy as jnp
from jax.experimental import pallas as pl
from jax.experimental.pallas import tpu as pltpu


def _round_up(x, m):
    return ((x + m - 1) // m) * m


def _vmem_budgets():
    """Return (out_tile_budget_bytes, vmem_limit_bytes) for this TPU generation."""
    cap = 64 * 1024 * 1024  # conservative default (v7x per-TensorCore VMEM)
    try:
        cap = int(pltpu.get_tpu_info().vmem_capacity_bytes)
    except Exception:
        pass
    if cap >= 96 * 1024 * 1024:                  # v5e / v6e: 128 MiB physical VMEM
        return 16 * 1024 * 1024, 48 * 1024 * 1024
    return 8 * 1024 * 1024, 24 * 1024 * 1024     # v7x: 64 MiB per TensorCore


def fourier_feature_kernel(x_ref, b2_ref, phase_ref, o_ref):
    # x_ref:     (tm, input_dim)   row tile
    # b2_ref:    (input_dim, 2*M)  2*pi*[B | B], resident across grid steps
    # phase_ref: (1, 2*M)          [0]*M ++ [pi/2]*M
    # o_ref:     (tm, 2*M)         output tile (single unmasked full-width store)
    x_proj = jnp.dot(x_ref[...], b2_ref[...], preferred_element_type=jnp.float32)
    # cos(t) == sin(t + pi/2): one lane-dense sin over the full 2*M-wide tile,
    # no lane-axis concatenate, no masked half-width stores.
    # TODO(synk): if a bundle dump confirms the VALU slot binds (likely on
    # v6e/v7x), replace with a hand-fused sincos sharing one range reduction.
    o_ref[...] = jnp.sin(x_proj + phase_ref[...]).astype(o_ref.dtype)


def fourier_feature_mapping(x, B, *, tm=512, out_dtype=jnp.float32):
    """x: (N, input_dim), B: (input_dim, mapping_size) -> (N, 2*mapping_size)."""
    N, input_dim = x.shape
    b_in, mapping_size = B.shape
    assert b_in == input_dim, "B must be (input_dim, mapping_size)"
    out_cols = 2 * mapping_size

    # Fold 2*pi into the tiny constant projection matrix once (wrapper-side),
    # duplicated so sin and cos share one MXU pass and one lane-dense store.
    # Keep the projection in f32: trig args reach O(100s) with scale=10.
    two_pi_b = (2.0 * math.pi) * B.astype(jnp.float32)
    b2 = jnp.concatenate([two_pi_b, two_pi_b], axis=-1)            # (input_dim, 2*M)
    phase = jnp.concatenate(
        [jnp.zeros((1, mapping_size), jnp.float32),
         jnp.full((1, mapping_size), 0.5 * math.pi, jnp.float32)],
        axis=-1)                                                    # (1, 2*M)

    out_tile_budget, vmem_limit = _vmem_budgets()
    out_itemsize = jnp.dtype(out_dtype).itemsize
    # Double-buffered output tile + f32 intermediate must fit the budget.
    bytes_per_row = out_cols * (2 * out_itemsize + 4)
    tm_vmem_cap = max(8, out_tile_budget // bytes_per_row)
    # Keep >= ~8 grid steps so v7x's two TensorCores both get row tiles.
    tm_core_cap = max(8, _round_up(pl.cdiv(N, 8), 8))
    tm = _round_up(max(8, min(tm, tm_vmem_cap, tm_core_cap)), 8)

    grid = (pl.cdiv(N, tm),)

    cost = pl.CostEstimate(
        flops=2 * N * input_dim * out_cols,
        transcendentals=N * out_cols,
        bytes_accessed=(N * input_dim * 4
                        + input_dim * out_cols * 4
                        + out_cols * 4
                        + N * out_cols * out_itemsize),
    )

    return pl.pallas_call(
        fourier_feature_kernel,
        out_shape=jax.ShapeDtypeStruct((N, out_cols), out_dtype),
        grid_spec=pltpu.PrefetchScalarGridSpec(
            num_scalar_prefetch=0,
            grid=grid,
            in_specs=[
                # Row tile of x; input_dim is tiny, keep it whole. The ragged
                # last block (N % tm != 0) is masked by Pallas — no wrapper pad.
                pl.BlockSpec((tm, input_dim), lambda i: (i, 0)),
                # B2 and phase are tiny constants, resident across grid steps.
                pl.BlockSpec((input_dim, out_cols), lambda i: (0, 0)),
                pl.BlockSpec((1, out_cols), lambda i: (0, 0)),
            ],
            out_specs=pl.BlockSpec((tm, out_cols), lambda i: (i, 0)),
        ),
        compiler_params=pltpu.CompilerParams(
            dimension_semantics=("parallel",),
            vmem_limit_bytes=vmem_limit,
        ),
        cost_estimate=cost,
    )(x.astype(jnp.float32), b2, phase)


def fourier_feature_mapping_ref(x, B):
    # Module semantics: 2*pi * x @ B -> [sin, cos].
    x_proj = x @ ((2.0 * math.pi) * B.astype(jnp.float32))
    return jnp.concatenate([jnp.sin(x_proj), jnp.cos(x_proj)], axis=-1)


if __name__ == "__main__":
    # Small shapes consistent with the module; N deliberately not a multiple
    # of 8 to exercise the ragged-last-block path (no wrapper pad/slice now).
    N = 100
    input_dim = 8
    mapping_size = 64
    scale = 10.0

    key = jax.random.PRNGKey(0)
    kx, kb = jax.random.split(key)
    x = jax.random.normal(kx, (N, input_dim), dtype=jnp.float32)
    # Deterministic stand-in for torch.randn((input_dim, mapping_size)) * scale
    B = jax.random.normal(kb, (input_dim, mapping_size), dtype=jnp.float32) * scale

    out = fourier_feature_mapping(x, B)
    out = jax.block_until_ready(out)

    ref = fourier_feature_mapping_ref(x, B)
    assert out.shape == (N, 2 * mapping_size)
    assert jnp.allclose(out, ref, atol=2e-3, rtol=2e-3), "mismatch vs reference"

    print("KERNEL_OK")
</pallas_src>

<mosaic_0001>
module attributes {stable_mosaic.version = 11 : i64} {
  func.func @fourier_feature_kernel(%arg0: i32, %arg1: memref<16x8xf32, #tpu.memory_space<vmem>>, %arg2: memref<8x128xf32, #tpu.memory_space<vmem>>, %arg3: memref<1x128xf32, #tpu.memory_space<vmem>>, %arg4: memref<16x128xf32, #tpu.memory_space<vmem>>) attributes {dimension_semantics = [#tpu.dimension_semantics<parallel>], iteration_bounds = array<i64: 7>, scalar_prefetch = 0 : i64, scratch_operands = 0 : i64, tpu.core_type = #tpu.core_type<tc>, window_params = [{transform_indices = @transform_0, window_bounds = array<i64: 16, 8>}, {pipeline_mode = #tpu.pipeline_mode<synchronous>, transform_indices = @transform_1, window_bounds = array<i64: 8, 128>}, {pipeline_mode = #tpu.pipeline_mode<synchronous>, transform_indices = @transform_2, window_bounds = array<i64: 1, 128>}, {transform_indices = @transform_3, window_bounds = array<i64: 16, 128>}]} {
    %c0 = arith.constant 0 : index
    %c0_0 = arith.constant 0 : index
    %0 = vector.load %arg1[%c0, %c0_0] : memref<16x8xf32, #tpu.memory_space<vmem>>, vector<16x8xf32>
    %c0_1 = arith.constant 0 : index
    %c0_2 = arith.constant 0 : index
    %1 = vector.load %arg2[%c0_1, %c0_2] : memref<8x128xf32, #tpu.memory_space<vmem>>, vector<8x128xf32>
    %cst = arith.constant dense<0.000000e+00> : vector<16x128xf32>
    %2 = tpu.matmul %0, %1, %cst {dimension_numbers = #tpu.dot_dimension_numbers<[1], [0], [0], [1], [0, 0, 1, 1], [], []>} : vector<16x8xf32>, vector<8x128xf32>, vector<16x128xf32> -> vector<16x128xf32>
    %c0_3 = arith.constant 0 : index
    %c0_4 = arith.constant 0 : index
    %3 = vector.load %arg3[%c0_3, %c0_4] : memref<1x128xf32, #tpu.memory_space<vmem>>, vector<1x128xf32>
    %4 = vector.broadcast %3 : vector<1x128xf32> to vector<16x128xf32>
    %5 = arith.addf %2, %4 : vector<16x128xf32>
    %6 = math.sin %5 : vector<16x128xf32>
    %c0_5 = arith.constant 0 : index
    %c0_6 = arith.constant 0 : index
    %7 = vector.load %arg4[%c0_5, %c0_6] : memref<16x128xf32, #tpu.memory_space<vmem>>, vector<16x128xf32>
    tpu.vector_store %arg4[%c0_5, %c0_6], %6 {strides = array<i32>} : memref<16x128xf32, #tpu.memory_space<vmem>>, vector<16x128xf32>,
    return
  }
  func.func @transform_0(%arg0: i32) -> (i32, i32) {
    %c0_i32 = arith.constant 0 : i32
    %c0_i32_0 = arith.constant 0 : i32
    return %arg0, %c0_i32 : i32, i32
  }
  func.func @transform_1(%arg0: i32) -> (i32, i32) {
    %c0_i32 = arith.constant 0 : i32
    %c0_i32_0 = arith.constant 0 : i32
    %c0_i32_1 = arith.constant 0 : i32
    return %c0_i32, %c0_i32_0 : i32, i32
  }
  func.func @transform_2(%arg0: i32) -> (i32, i32) {
    %c0_i32 = arith.constant 0 : i32
    %c0_i32_0 = arith.constant 0 : i32
    %c0_i32_1 = arith.constant 0 : i32
    return %c0_i32, %c0_i32_0 : i32, i32
  }
  func.func @transform_3(%arg0: i32) -> (i32, i32) {
    %c0_i32 = arith.constant 0 : i32
    %c0_i32_0 = arith.constant 0 : i32
    return %arg0, %c0_i32 : i32, i32
  }
}

</mosaic_0001>

<bundles_post_ra>
// kernel: tpu_custom_call.1
= control target key start
LH: loop header
LB: loop body
LE: loop exit
PB: predicated region body
PF: predicated region fallthrough
CT: control target
= control target key end

     0   :  { %8 = vsyncpa [#allocation3], 0  ;;  %s1123_s0 = inlined_call_operand.vmem [shape: f32[100,8], index: 0, kind: input, shape index: {}]   ;;  %s1124_s1 = inlined_call_operand.vmem [shape: f32[8,128], index: 1, kind: input, shape index: {}]   ;;  %s1125_s2 = inlined_call_operand.vmem [shape: f32[1,128], index: 2, kind: input, shape index: {}]   ;;  %s1126_s3 = inlined_call_operand.hbm [shape: f32[100,128], index: 3, kind: output, shape index: {}]  }
   0x1   :  { %10 = vsyncpa [#allocation3 + $0x1], 0  ;;  %s809_s12 = smov 0   ;;  %s811_s13 = smov 0  }
   0x2   :  { %s813_s14 = smov 0   ;;  %s815_s15 = smov 0  }
   0x3 LB: > { %s830_s16 = sadd.s32 4294967295, %s777_s15   ;;  %s630_s17 = sadd.s32 4294967294, %s777_s15   ;;  %s777_s15 = sphi %s815_s15, %s1137_s15   ;;  %s773_s14 = sphi %s813_s14, %s1136_s14   ;;  %s769_s13 = sphi %s811_s13, %s1135_s13   ;;  %s765_s12 = sphi %s809_s12, %s1134_s12  }
   0x4   : > { %s834_s18 = sadd.s32 1, %s777_s15   ;;  %s91_s19 = sadd.s32 1, %s773_s14 }
   0x5   : > { %s88_s20 = ssub.s32 %s777_s15, %s834_s18  ;;  %p101_p0 = scmp.ne.s32.totalorder %s773_s14, %s769_s13 }
   0x6   : > { %p89_p1 = scmp.eq.s32.totalorder %s88_s20, 0  ;;  %p102_p2 = scmp.eq.s32.totalorder %s830_s16, 6 }
   0x7   : > { %p107_p3 = scmp.ne.s32.totalorder %s769_s13, %s765_s12  ;;  %p108_p4 = scmp.eq.s32.totalorder %s630_s17, 6 }
   0x8   : > { %s845_s21 = scalar_select %p89_p1, %s773_s14, %s91_s19  }
   0x9   : > { %p847_p5 = por %p102_p2, %p101_p0  ;;  %p851_p6 = por %p108_p4, %p107_p3 }
   0xa   : > { %p633_p7 = scmp.ge.s32.totalorder %s777_s15, 1  ;;  %p149_p8 = scmp.lt.s32.totalorder %s777_s15, 8 }
   0xc   : > { %p150_p9 = pnand %p633_p7, %p149_p8 }
   0xd   : > { %s861_s26 = sshll.u32 (!%p150_p9), %s830_s16, 1  ;;  %s174_s5 = sand.u32 (!%p150_p9), 1, %s769_s13  }
   0xe   : > { %153 = sbr.rel (%p150_p9) target bundleno = 297 (0x129), region = 32  ;;  %p182_p10 = scmp.lt.s32.totalorder (!%p150_p9), %s861_s26, 12 }
   0xf   : > { %s634_s8 = sshll.u32 (!%p150_p9), %s174_s5, 4  ;;  %s1062_s10 = scalar_lea.sflag (!%p150_p9), [#allocation3], %s174_s5 }
  0x10   : > { %s1050_s9 = scalar_lea.vmem (!%p150_p9), [#allocation2], %s634_s8 }
  0x13   : > { %v198_v0 = vld [vmem:[%s1124_s1] sm:$0xff]  ;;  %s183_s27 = scalar_select %p182_p10, %s861_s26, 12  ;;  %vm203_vm0 = vcmask 64512   ;;  %v779_v31 = vmov 683565275  }
  0x14   : > { %225 = vmatpush.msra.mxu0 %v198_v0  ;;  %655 = vmatpush.msra.mxu1 %v198_v0  ;;  %v703_v3 = vld [vmem:[%s1125_s2] ss:$0 sm:$0xff]  ;;  %v780_v33 = vmov 2475754826   ;;  %v781_v37 = vmov 2131351028  }
  0x15   : > { %s636_s28 = sshll.u32 %s183_s27, 3  ;;  %v782_v40 = vmov 2102212464   ;;  %v783_v43 = vmov 920167782   ;;  %s554_s11 = ssub.s32 (%p847_p5), 13, %s861_s26 }
  0x16   : > { %s185_s4 = scalar_lea.vmem %s1123_s0, %s636_s28  ;;  %v784_v46 = vmov 1326507024   ;;  %p555_p11 = scmp.lt.s32.totalorder (%p847_p5), %s554_s11, 2 }
  0x17   : > { %v196_v1 = vld [vmem:[%s185_s4] sm:$0xff]  ;;  %v197_v2 = vld [vmem:[%s185_s4 + $0x8] sm:$0xff] }
  0x18   : > { %637 = vmatmul.msk.f32.vlgmr.msra.gmra.mxu0 %vm203_vm0, %v196_v1  ;;  %638 = vmatmul.msk.f32.vlgmr.msra.gmra.mxu1 %vm203_vm0, %v197_v2 }
  0x95   : > { %v227_v4 = vpop.f32.mrf.mxu0  ;;  %v230_v5 = vpop.f32.mrf.mxu1 }
  0x96   : > { %v872_v6 = vadd.f32 %v703_v3, %v227_v4  ;;  %v874_v7 = vadd.f32 %v703_v3, %v230_v5 }
  0x98   : > { %v233_v8 = vand.u32 2147483647, %v872_v6  ;;  %v236_v9 = vand.u32 2139095040, %v872_v6  ;;  %v388_v10 = vand.u32 2147483647, %v874_v7  ;;  %v391_v11 = vand.u32 2139095040, %v874_v7 }
  0x9a   : > { %v237_v12 = vshrl.u32 %v236_v9, 23  ;;  %v240_v13 = vand.u32 8388607, %v233_v8  ;;  %v392_v14 = vshrl.u32 %v391_v11, 23  ;;  %v395_v17 = vand.u32 8388607, %v388_v10 }
  0x9c   : > { %v639_v15 = vadd.s32 4294967169, %v237_v12  ;;  %v241_v16 = vor.u32 8388608, %v240_v13  ;;  %v642_v18 = vadd.s32 4294967169, %v392_v14  ;;  %v396_v22 = vor.u32 8388608, %v395_v17 }
  0x9e   : > { %v243_v19 = vadd.s32 1, %v639_v15  ;;  %v398_v20 = vadd.s32 1, %v642_v18  ;;  %v884_v21 = vshll.u32 %v241_v16, 8  ;;  %v891_v29 = vshll.u32 %v396_v22, 8 }
  0xa0   : > { %vm244_vm1 = vcmp.gt.s32.totalorder %v243_v19, 0  ;;  %vm399_vm2 = vcmp.gt.s32.totalorder %v398_v20, 0  ;;  %v887_v27 = vand.u32 65535, %v884_v21  ;;  %v283_v35 = vshrl.u32 %v884_v21, 16 }
  0xa1   : > { %v245_v23 = vsel %vm244_vm1, %v243_v19, 0  ;;  %v400_v25 = vsel %vm399_vm2, %v398_v20, 0 }
  0xa2   : > { %v247_v24 = vand.u32 31, %v245_v23  ;;  %v889_v28 = vand.u32 31, %v400_v25  ;;  %v893_v30 = vshrl.u32 %v245_v23, 5  ;;  %v931_v14 = vshrl.u32 %v400_v25, 5 }
  0xa4   : > { %v248_v26 = vsub.s32 32, %v247_v24  ;;  %v250_v32 = vshll.u32 %v779_v31, %v247_v24  ;;  %v253_v34 = vshll.u32 %v780_v33, %v247_v24  ;;  %v256_v39 = vshll.u32 %v781_v37, %v247_v24 }
  0xa5   : > { %v259_v42 = vshll.u32 %v782_v40, %v247_v24  ;;  %v262_v45 = vshll.u32 %v783_v43, %v247_v24  ;;  %v903_v51 = vsub.s32 32, %v889_v28  ;;  %vm265_vm3 = vcmp.lt.s32.totalorder %v893_v30, 1 }
  0xa6   : > { %v251_v36 = vshrl.u32 %v780_v33, %v248_v26  ;;  %v254_v38 = vshrl.u32 %v781_v37, %v248_v26  ;;  %v257_v41 = vshrl.u32 %v782_v40, %v248_v26  ;;  %v260_v44 = vshrl.u32 %v783_v43, %v248_v26 }
  0xa7   : > { %v263_v47 = vshrl.u32 %v784_v46, %v248_v26  ;;  %vm266_vm4 = vcmp.lt.s32.totalorder %v893_v30, 2  ;;  %v249_v54 = vshrl.u32 %v779_v31, %v248_v26  ;;  %vm268_vm5 = vcmp.lt.s32.totalorder %v893_v30, 4 }
  0xa8   : > { %v252_v48 = vor.u32 %v251_v36, %v250_v32  ;;  %v255_v49 = vor.u32 %v254_v38, %v253_v34  ;;  %v258_v50 = vor.u32 %v257_v41, %v256_v39  ;;  %v261_v52 = vor.u32 %v260_v44, %v259_v42 }
  0xa9   : > { %v264_v53 = vor.u32 %v263_v47, %v262_v45  ;;  %vm267_vm6 = vcmp.lt.s32.totalorder %v893_v30, 3  ;;  %v405_v59 = vshll.u32 %v779_v31, %v889_v28  ;;  %v406_v63 = vshrl.u32 %v780_v33, %v903_v51 }
  0xaa   : > { %v273_v55 = vsel %vm265_vm3, %v252_v48, %v255_v49  ;;  %v277_v56 = vsel %vm265_vm3, %v255_v49, %v258_v50  ;;  %v274_v57 = vsel %vm268_vm5, %v261_v52, 920167782  ;;  %v270_v60 = vsel %vm268_vm5, %v258_v50, 2102212464 }
  0xab   : > { %v278_v58 = vsel %vm268_vm5, %v264_v53, 1326507024  ;;  %v275_v61 = vsel %vm267_vm6, %v258_v50, %v274_v57  ;;  %v408_v2 = vshll.u32 %v780_v33, %v889_v28  ;;  %v409_v3 = vshrl.u32 %v781_v37, %v903_v51 }
  0xac   : > { %v279_v62 = vsel %vm267_vm6, %v261_v52, %v278_v58  ;;  %v276_v0 = vsel %vm266_vm4, %v273_v55, %v275_v61  ;;  %v269_v12 = vsel %vm265_vm3, %v249_v54, %v252_v48  ;;  %v271_v13 = vsel %vm267_vm6, %v255_v49, %v270_v60 }
  0xad   : > { %v280_v1 = vsel %vm266_vm4, %v277_v56, %v279_v62  ;;  %v306_v9 = vand.u32 65535, %v276_v0  ;;  %v307_v11 = vshrl.u32 %v276_v0, 16  ;;  %v933_v15 = vor.u32 %v406_v63, %v405_v59 }
  0xae   : > { %v284_v4 = vand.u32 65535, %v280_v1  ;;  %v285_v5 = vshrl.u32 %v280_v1, 16  ;;  %v936_v18 = vor.u32 %v409_v3, %v408_v2  ;;  %v412_v19 = vshrl.u32 %v782_v40, %v903_v51 }
  0xaf   : > { %v309_v22 = vmul.u32 %v307_v11, %v887_v27  ;;  %v310_v23 = vmul.u32 %v306_v9, %v283_v35  ;;  %v411_v24 = vshll.u32 %v781_v37, %v889_v28  ;;  %v308_v32 = vmul.u32 %v306_v9, %v887_v27 }
  0xb0   : > { %v287_v16 = vmul.u32 %v285_v5, %v887_v27  ;;  %v288_v17 = vmul.u32 %v284_v4, %v283_v35  ;;  %v286_v20 = vmul.u32 %v284_v4, %v887_v27  ;;  %v289_v26 = vmul.u32 %v285_v5, %v283_v35 }
  0xb1   : > { %v311_v33 = vmul.u32 %v307_v11, %v283_v35  ;;  %v312_v39 = vshll.u32 %v309_v22, 16  ;;  %v314_v42 = vshll.u32 %v310_v23, 16  ;;  %v944_v44 = vor.u32 %v412_v19, %v411_v24 }
  0xb2   : > { %v290_v25 = vshll.u32 %v287_v16, 16  ;;  %v291_v34 = vshrl.u32 %v287_v16, 16  ;;  %v292_v36 = vshll.u32 %v288_v17, 16  ;;  %v293_v38 = vshrl.u32 %v288_v17, 16 }
  0xb3   : > { %v785_v45 = vmov 0   ;;  %vm316_vm8 = vc.u32 %v308_v32, %v312_v39  ;;  %v318_v48 = vadd.s32 %v312_v39, %v308_v32  ;;  %v415_v37 = vshrl.u32 %v783_v43, %v903_v51 }
  0xb4   : > { %vm294_vm7 = vc.u32 %v286_v20, %v290_v25  ;;  %v296_v41 = vadd.s32 %v290_v25, %v286_v20  ;;  %v317_v27 = vsel %vm316_vm8, 1, %v785_v45  ;;  %v414_v35 = vshll.u32 %v782_v40, %v889_v28 }
  0xb5   : > { %v295_v47 = vsel %vm294_vm7, 1, %v785_v45  ;;  %v319_v52 = vadd.s32 %v317_v27, %v311_v33  ;;  %vm320_vm10 = vc.u32 %v318_v48, %v314_v42  ;;  %v417_v53 = vshll.u32 %v783_v43, %v889_v28 }
  0xb6   : > { %v297_v49 = vadd.s32 %v295_v47, %v289_v26  ;;  %vm298_vm9 = vc.u32 %v296_v41, %v292_v36  ;;  %v321_v55 = vsel %vm320_vm10, 1, %v785_v45  ;;  %v416_v56 = vor.u32 %v415_v37, %v414_v35 }
  0xb7   : > { %v299_v50 = vsel %vm298_vm9, 1, %v785_v45  ;;  %v418_v57 = vshrl.u32 %v784_v46, %v903_v51  ;;  %v313_v58 = vshrl.u32 %v309_v22, 16  ;;  %v315_v59 = vshrl.u32 %v310_v23, 16 }
  0xb8   : > { %v301_v54 = vadd.s32 %v299_v50, %v297_v49  ;;  %v958_v60 = vadd.s32 %v318_v48, %v314_v42  ;;  %v323_v61 = vadd.s32 %v321_v55, %v319_v52  ;;  %vm420_vm11 = vcmp.lt.s32.totalorder %v931_v14, 1 }
  0xb9   : > { %v419_v62 = vor.u32 %v418_v57, %v417_v53  ;;  %vm423_vm12 = vcmp.lt.s32.totalorder %v931_v14, 4  ;;  %vm422_vm13 = vcmp.lt.s32.totalorder %v931_v14, 3  ;;  %v428_v28 = vsel %vm420_vm11, %v933_v15, %v936_v18 }
  0xba   : > { %v302_v40 = vadd.s32 %v301_v54, %v291_v34  ;;  %v324_v63 = vadd.s32 %v323_v61, %v313_v58  ;;  %v429_v43 = vsel %vm423_vm12, %v416_v56, 920167782  ;;  %vm421_vm14 = vcmp.lt.s32.totalorder %v931_v14, 2 }
  0xbb   : > { %v430_v0 = vsel %vm422_vm13, %v944_v44, %v429_v43  ;;  %v432_v1 = vsel %vm420_vm11, %v936_v18, %v944_v44  ;;  %v272_v2 = vsel %vm266_vm4, %v269_v12, %v271_v13  ;;  %v433_v5 = vsel %vm423_vm12, %v419_v62, 1326507024 }
  0xbc   : > { %v969_v46 = vadd.s32 %v302_v40, %v293_v38  ;;  %v325_v3 = vadd.s32 %v324_v63, %v315_v59  ;;  %v431_v4 = vsel %vm421_vm14, %v428_v28, %v430_v0  ;;  %v434_v9 = vsel %vm422_vm13, %v416_v56, %v433_v5 }
  0xbd   : > { %v437_v11 = vand.u32 65535, %v891_v29  ;;  %v461_v16 = vand.u32 65535, %v431_v4  ;;  %v435_v30 = vsel %vm421_vm14, %v432_v1, %v434_v9  ;;  %v438_v12 = vshrl.u32 %v891_v29, 16 }
  0xbe   : > { %vm328_vm15 = vc.u32 %v969_v46, %v958_v60  ;;  %v329_v17 = vadd.s32 1, %v325_v3  ;;  %v462_v13 = vshrl.u32 %v431_v4, 16  ;;  %v326_v19 = vmul.u32 %v884_v21, %v272_v2 }
  0xbf   : > { %v439_v20 = vand.u32 65535, %v435_v30  ;;  %v440_v22 = vshrl.u32 %v435_v30, 16  ;;  %v465_v26 = vmul.u32 %v461_v16, %v438_v12  ;;  %v463_v34 = vmul.u32 %v461_v16, %v437_v11 }
  0xc0   : > { %v330_v23 = vsel %vm328_vm15, %v329_v17, %v325_v3  ;;  %v464_v24 = vmul.u32 %v462_v13, %v437_v11  ;;  %v466_v36 = vmul.u32 %v462_v13, %v438_v12  ;;  %v425_v54 = vsel %vm423_vm12, %v944_v44, 2102212464 }
  0xc1   : > { %v331_v25 = vadd.s32 %v330_v23, %v326_v19  ;;  %v442_v32 = vmul.u32 %v440_v22, %v437_v11  ;;  %v443_v33 = vmul.u32 %v439_v20, %v438_v12  ;;  %v441_v41 = vmul.u32 %v439_v20, %v437_v11 }
  0xc2   : > { %v467_v38 = vshll.u32 %v464_v24, 16  ;;  %v444_v42 = vmul.u32 %v440_v22, %v438_v12  ;;  %v469_v37 = vshll.u32 %v465_v26, 16  ;;  %v404_v56 = vshrl.u32 %v779_v31, %v903_v51 }
  0xc3   : > { %v332_v39 = vadd.s32 536870912, %v331_v25  ;;  %v445_v47 = vshll.u32 %v442_v32, 16  ;;  %v447_v48 = vshll.u32 %v443_v33, 16  ;;  %v446_v61 = vshrl.u32 %v442_v32, 16 }
  0xc4   : > { %vm471_vm0 = vc.u32 %v463_v34, %v467_v38  ;;  %v473_v49 = vadd.s32 %v467_v38, %v463_v34  ;;  %v424_v63 = vsel %vm420_vm11, %v404_v56, %v933_v15  ;;  %v426_v44 = vsel %vm422_vm13, %v936_v18, %v425_v54 }
  0xc5   : > { %v994_v21 = vshrl.u32 %v332_v39, 30  ;;  %vm449_vm1 = vc.u32 %v441_v41, %v445_v47  ;;  %v451_v27 = vadd.s32 %v445_v47, %v441_v41  ;;  %v472_v35 = vsel %vm471_vm0, 1, %v785_v45 }
  0xc6   : > { %v450_v50 = vsel %vm449_vm1, 1, %v785_v45  ;;  %v474_v52 = vadd.s32 %v472_v35, %v466_v36  ;;  %vm475_vm2 = vc.u32 %v473_v49, %v469_v37  ;;  %v468_v28 = vshrl.u32 %v464_v24, 16 }
  0xc7   : > { %v334_v53 = vshll.u32 %v994_v21, 30  ;;  %v452_v55 = vadd.s32 %v450_v50, %v444_v42  ;;  %vm453_vm3 = vc.u32 %v451_v27, %v447_v48  ;;  %v476_v58 = vsel %vm475_vm2, 1, %v785_v45 }
  0xc8   : > { %v454_v57 = vsel %vm453_vm3, 1, %v785_v45  ;;  %v478_v62 = vadd.s32 %v476_v58, %v474_v52  ;;  %v448_v31 = vshrl.u32 %v443_v33, 16  ;;  %v470_v0 = vshrl.u32 %v465_v26, 16 }
  0xc9   : > { %v335_v59 = vsub.s32 %v331_v25, %v334_v53  ;;  %v456_v40 = vadd.s32 %v454_v57, %v452_v55  ;;  %v427_v4 = vsel %vm421_vm14, %v424_v63, %v426_v44  ;;  %v477_v5 = vadd.s32 %v473_v49, %v469_v37 }
  0xca   : > { %v479_v1 = vadd.s32 %v478_v62, %v468_v28  ;;  %v481_v18 = vmul.u32 %v891_v29, %v427_v4  ;;  %v327_v12 = vadd.s32 %v958_v60, %v969_v46  ;;  %vm235_vm8 = vcmp.lt.s32.totalorder %v872_v6, 0 }
  0xcb   : > { %vm336_vm4 = vcmp.lt.s32.totalorder %v335_v59, 0  ;;  %v337_v43 = vsub.s32 0, %v335_v59  ;;  %v457_v51 = vadd.s32 %v456_v40, %v446_v61  ;;  %vm1023_vm9 = vcmp.le.f32.partialorder %v233_v8, 0.7853982 }
  0xcc   : > { %v480_v9 = vadd.s32 %v479_v1, %v470_v0  ;;  %v357_v37 = vsub.s32 4, %v994_v21  ;;  %vm1038_vm11 = vcmp.le.f32.partialorder %v388_v10, 0.7853982  ;;  %vm390_vm12 = vcmp.lt.s32.totalorder %v874_v7, 0 }
  0xcd   : > { %v338_v45 = vsel %vm336_vm4, %v337_v43, %v335_v59  ;;  %v458_v2 = vadd.s32 %v457_v51, %v448_v31  ;;  %vm376_vm0 = vweird.f32 %v872_v6  ;;  %vm531_vm4 = vweird.f32 %v874_v7 }
  0xce   : > { %v339_v3 = vclz %v338_v45  ;;  %v484_v11 = vadd.s32 1, %v480_v9  ;;  %v358_v8 = vsel %vm235_vm8, %v357_v37, %v994_v21 }
  0xcf   : > { %vm483_vm5 = vc.u32 %v458_v2, %v477_v5  ;;  %v482_v53 = vadd.s32 %v477_v5, %v458_v2  ;;  %v360_v40 = vsel %vm1023_vm9, 0, %v358_v8 }
  0xd0   : > { %v640_v15 = vadd.s32 4294967294, %v339_v3  ;;  %v485_v16 = vsel %vm483_vm5, %v484_v11, %v480_v9  ;;  %v377_v51 = vadd.s32 3, %v360_v40 }
  0xd1   : > { %v486_v30 = vadd.s32 %v485_v16, %v481_v18 }
  0xd2   : > { %vm641_vm6 = vcmp.lt.s32.totalorder %v640_v15, 0  ;;  %v378_v5 = vand.u32 3, %v377_v51 }
  0xd3   : > { %v342_v17 = vsel %vm641_vm6, 0, %v640_v15  ;;  %v487_v20 = vadd.s32 536870912, %v486_v30 }
  0xd4   : > { %v343_v13 = vsub.s32 32, %v342_v17  ;;  %v347_v19 = vsub.s32 4294967266, %v342_v17  ;;  %v344_v22 = vshll.u32 %v335_v59, %v342_v17  ;;  %vm379_vm13 = vcmp.lt.s32.totalorder %v378_v5, 2 }
  0xd5   : > { %v1017_v24 = vshrl.u32 %v487_v20, 30  ;;  %vm380_vm14 = vcmp.eq.s32.totalorder %v378_v5, 0  ;;  %vm383_vm15 = vcmp.eq.s32.totalorder %v378_v5, 2 }
  0xd6   : > { %v345_v14 = vshrl.u32 %v327_v12, %v343_v13  ;;  %v348_v23 = vadd.s32 127, %v347_v19 }
  0xd7   : > { %v489_v32 = vshll.u32 %v1017_v24, 30  ;;  %v512_v19 = vsub.s32 4, %v1017_v24 }
  0xd8   : > { %v346_v26 = vor.u32 %v345_v14, %v344_v22  ;;  %v349_v25 = vshll.u32 %v348_v23, 23 }
  0xd9   : > { %v490_v33 = vsub.s32 %v486_v30, %v489_v32 }
  0xda   : > { %v350_v29 = vor.u32 4788187, %v349_v25  ;;  %v353_v36 = vcvt.s32.f32 %v346_v26  ;;  %v513_v25 = vsel %vm390_vm12, %v512_v19, %v1017_v24 }
  0xdb   : > { %vm491_vm7 = vcmp.lt.s32.totalorder %v490_v33, 0  ;;  %v492_v38 = vsub.s32 0, %v490_v33 }
  0xdc   : > { %v351_v34 = vand.u32 2147483647, %v350_v29 }
  0xdd   : > { %v493_v60 = vsel %vm491_vm7, %v492_v38, %v490_v33 }
  0xde   : > { %v354_v39 = vmul.f32 %v353_v36, %v351_v34  ;;  %v494_v41 = vclz %v493_v60 }
  0xe0   : > { %v355_v46 = vxor.u32 2147483648, %v354_v39  ;;  %v643_v48 = vadd.s32 4294967294, %v494_v41 }
  0xe2   : > { %v356_v47 = vsel %vm235_vm8, %v355_v46, %v354_v39  ;;  %vm644_vm10 = vcmp.lt.s32.totalorder %v643_v48, 0 }
  0xe3   : > { %v359_v49 = vsel %vm1023_vm9, %v872_v6, %v356_v47  ;;  %v497_v35 = vsel %vm644_vm10, 0, %v643_v48 }
  0xe4   : > { %v361_v27 = vmul.f32 %v359_v49, %v359_v49  ;;  %v498_v54 = vsub.s32 32, %v497_v35  ;;  %v502_v55 = vsub.s32 4294967266, %v497_v35  ;;  %v499_v59 = vshll.u32 %v490_v33, %v497_v35 }
  0xe5   : > { %v515_v33 = vsel %vm1038_vm11, 0, %v513_v25 }
  0xe6   : > { %v362_v50 = vmul.f32 -0.001358992, %v361_v27  ;;  %v369_v52 = vmul.f32 -0.00019511016, %v361_v27  ;;  %v500_v58 = vshrl.u32 %v482_v53, %v498_v54  ;;  %v503_v61 = vadd.s32 127, %v502_v55 }
  0xe7   : > { %v532_v39 = vadd.s32 3, %v515_v33 }
  0xe8   : > { %v363_v56 = vadd.f32 0.041655596, %v362_v50  ;;  %v370_v57 = vadd.f32 0.008332121, %v369_v52  ;;  %v501_v44 = vor.u32 %v500_v58, %v499_v59  ;;  %v504_v28 = vshll.u32 %v503_v61, 23 }
  0xe9   : > { %v533_v47 = vand.u32 3, %v532_v39 }
  0xea   : > { %v364_v62 = vmul.f32 %v363_v56, %v361_v27  ;;  %v371_v63 = vmul.f32 %v370_v57, %v361_v27  ;;  %v505_v0 = vor.u32 4788187, %v504_v28  ;;  %v508_v2 = vcvt.s32.f32 %v501_v44 }
  0xeb   : > { %vm535_vm1 = vcmp.eq.s32.totalorder %v533_v47, 0  ;;  %vm538_vm2 = vcmp.eq.s32.totalorder %v533_v47, 2  ;;  %vm534_vm3 = vcmp.lt.s32.totalorder %v533_v47, 2 }
  0xec   : > { %v365_v43 = vadd.f32 -0.4999988, %v364_v62  ;;  %v372_v31 = vadd.f32 -0.16666654, %v371_v63  ;;  %v506_v45 = vand.u32 2147483647, %v505_v0 }
  0xee   : > { %v366_v1 = vmul.f32 %v365_v43, %v361_v27  ;;  %v373_v21 = vmul.f32 %v372_v31, %v361_v27  ;;  %v509_v9 = vmul.f32 %v508_v2, %v506_v45 }
  0xf0   : > { %v367_v3 = vadd.f32 1.0, %v366_v1  ;;  %v374_v4 = vadd.f32 1.0, %v373_v21  ;;  %v510_v18 = vxor.u32 2147483648, %v509_v9 }
  0xf2   : > { %v375_v15 = vmul.f32 %v374_v4, %v359_v49  ;;  %v384_v11 = vxor.u32 2147483648, %v367_v3  ;;  %v511_v30 = vsel %vm390_vm12, %v510_v18, %v509_v9 }
  0xf3   : > { %v514_v20 = vsel %vm1038_vm11, %v874_v7, %v511_v30 }
  0xf4   : > { %v381_v16 = vxor.u32 2147483648, %v375_v15  ;;  %v385_v13 = vsel %vm383_vm15, %v384_v11, %v375_v15  ;;  %v516_v22 = vmul.f32 %v514_v20, %v514_v20 }
  0xf6   : > { %v382_v12 = vsel %vm380_vm14, %v367_v3, %v381_v16  ;;  %v517_v23 = vmul.f32 -0.001358992, %v516_v22  ;;  %v524_v26 = vmul.f32 -0.00019511016, %v516_v22 }
  0xf7   : > { %v386_v10 = vsel %vm379_vm13, %v382_v12, %v385_v13 }
  0xf8   : > { %v387_v14 = vsel %vm376_vm0, nan, %v386_v10  ;;  %v518_v32 = vadd.f32 0.041655596, %v517_v23  ;;  %v525_v29 = vadd.f32 0.008332121, %v524_v26 }
  0xf9   : > { %543 = vst [vmem:[%s1050_s9] sm:$0xff] %v387_v14 }
  0xfa   : > { %v519_v34 = vmul.f32 %v518_v32, %v516_v22  ;;  %v526_v6 = vmul.f32 %v525_v29, %v516_v22 }
  0xfc   : > { %v520_v36 = vadd.f32 -0.4999988, %v519_v34  ;;  %v527_v38 = vadd.f32 -0.16666654, %v526_v6 }
  0xfe   : > { %v521_v60 = vmul.f32 %v520_v36, %v516_v22  ;;  %v528_v46 = vmul.f32 %v527_v38, %v516_v22 }
 0x100   : > { %v522_v41 = vadd.f32 1.0, %v521_v60  ;;  %v529_v42 = vadd.f32 1.0, %v528_v46 }
 0x102   : > { %v530_v48 = vmul.f32 %v529_v42, %v514_v20  ;;  %v539_v37 = vxor.u32 2147483648, %v522_v41 }
 0x104   : > { %v536_v24 = vxor.u32 2147483648, %v530_v48  ;;  %v540_v27 = vsel %vm538_vm2, %v539_v37, %v530_v48 }
 0x105   : > { %552 = sbr.rel (!%p847_p5) target bundleno = 297 (0x129), region = 36 }
 0x106   : > { %v537_v49 = vsel %vm535_vm1, %v522_v41, %v536_v24 }
 0x107   : > { %v541_v35 = vsel %vm534_vm3, %v537_v49, %v540_v27 }
 0x108   : > { %v542_v50 = vsel %vm531_vm4, nan, %v541_v35 }
 0x109   : > { %544 = vst [vmem:[%s1050_s9 + $0x8] sm:$0xff] %v542_v50 }
 0x10a   : > { %s1139_s11 = smov (!%p555_p11, %s554_s11), 2 }
 0x10b   : > { %s647_s17 = sshll.u32 %s1139_s11, 3 }
 0x10c   : > { %s558_s19 = ssub.s32 16, %s647_s17 }
 0x10d   : > { %s559_s20 = sshll.u32 %s558_s19, 4 }
 0x10e   : > { %560 = vsyncadd %s1062_s10, %s559_s20  ;;  %p1071_p12 = scmp.ne.s32.totalorder %s647_s17, 0  ;;  %s654_s22 = sshll.u32 %s830_s16, 4 }
 0x10f   : > { %s563_s27 = scalar_lea.hbm %s1126_s3, %s654_s22  ;;  %s565_s28 = sshll.u32 %s1050_s9, 4  ;;  %s1080_s28 = int_to_ptr.vmem [resolvable:$true] %s565_s28 }
 0x110   : > { %s567_s29 = sshll.u32 %s563_s27, 4  ;;  %s651_s30 = sshll.u32 %s1139_s11, 7  ;;  %s1082_s29 = int_to_ptr.hbm [resolvable:$true] %s567_s29 }
 0x111   : > { %s704_s4 = sshra.s32 %s1080_s28, 4  ;;  %s706_s5 = sshrl.u32 %s651_s30, 4  ;;  %s705_s4 = int_to_ptr.vmem [resolvable:$true] %s704_s4 }
 0x112   : > { %s711_s6 = scalar_lea.vmem %s705_s4, %s706_s5  ;;  %s786_s16 = smov [#allocation2]  }
 0x113   : > { %p712_p13 = scmp.ne.s32.totalorder %s705_s4, %s711_s6  ;;  %s715_s7 = scalar_lea.vmem %s786_s16, 32 }
 0x114   : > { %p717_p2 = scmp.lt.s32.totalorder %s715_s7, %s711_s6 }
 0x115   : > { %p713_p0 = pnand %p712_p13, %p1071_p12 }
 0x117   : > { %p714_p1 = pneg %p713_p0 }
 0x119   : > { %p719_p3 = pnand %p717_p2, %p714_p1 }
 0x11b   : > { %722 = shalt.err (!%p719_p3)
}
 0x11c   : > { %s723_s8 = sshra.s32 %s1082_s29, 4  ;;  %s734_s20 = scalar_lea.hbm %s1126_s3, 104  ;;  %s724_s8 = int_to_ptr.hbm [resolvable:$true] %s723_s8 }
 0x11d   : > { %s730_s9 = scalar_lea.hbm %s724_s8, %s706_s5  ;;  %p735_p8 = scmp.lt.s32.totalorder %s724_s8, %s1126_s3 }
 0x11e   : > { %p731_p4 = scmp.ne.s32.totalorder %s724_s8, %s730_s9  ;;  %p736_p9 = scmp.lt.s32.totalorder %s734_s20, %s730_s9 }
 0x120   : > { %p732_p5 = pnand %p731_p4, %p1071_p12  ;;  %p737_p10 = por %p736_p9, %p735_p8 }
 0x122   : > { %p733_p7 = pneg %p732_p5 }
 0x124   : > { %p738_p11 = pnand %p737_p10, %p733_p7 }
 0x126   : > { %741 = shalt.err (!%p738_p11)
}
 0x127   : > { %s787_s26 = smov 128   ;;  %s788_s27 = smov 8  }
 0x128   : > { %573 = dma.vmem_to_hbm [thread:$0]  (%p1071_p12), %s1080_s28, %s651_s30, %s1082_s29, %s1062_s10, %s787_s26, %s787_s26, %s788_s27  }
 0x129 PF: > { %p661_p13 = scmp.ge.s32.totalorder %s777_s15, 2  ;;  %s582_s4 = sand.u32 1, %s765_s12  }
 0x12a   : > { %s583_s5 = scalar_lea.sflag [#allocation3], %s582_s4 }
 0x12b   : > { %p658_p0 = pnand %p661_p13, %p851_p6 }
 0x12d   : > { %p659_p1 = pneg %p658_p0 }
 0x12f   : > { %760 = dma.done.wait (%p659_p1), %s583_s5, 256  }
 0x130   : > { %762 = vsyncadd (%p659_p1), %s583_s5, 4294967040  ;;  %p13_p2 = scmp.ge.s32.totalorder %s834_s18, 9   ;;  %s1134_s12 = smov %s769_s13 }
 0x131   : > { %s1135_s13 = smov %s773_s14  ;;  %s1136_s14 = smov %s845_s21 }
 0x132   : > { %s1137_s15 = smov %s834_s18  ;;  %15 = sbr.rel (!%p13_p2) target bundleno = 3 (0x3), region = 67 }
 0x137   :  { %589 = vsyncpa [#allocation3], 1 }
 0x138   :  { %591 = vsyncpa [#allocation3 + $0x1], 1 }

</bundles_post_ra>
